<compile_context>
chip_gen: v7x
topology: tpu7x:2x2x1
jax: 0.10.0
libtpu: 0.0.40
codegen_flags: <defaults>
</compile_context>

<pallas_src>
import math

import jax
import jax.numpy as jnp
from jax.experimental import pallas as pl
from jax.experimental.pallas import tpu as pltpu

_SUBLANE = 8
_LANE = 128


def _round_up(n, m):
    return ((n + m - 1) // m) * m


def _pad2(a, rows, cols):
    return jnp.pad(a, ((0, rows - a.shape[0]), (0, cols - a.shape[1])))


# ---------------------------------------------------------------------------
# Kernels
# ---------------------------------------------------------------------------

def _noisy_linear_kernel(x_ref, xn_ref, wmu_ref, wsig_ref, ovec_ref, o_ref,
                         acc_mu_ref, acc_sig_ref):
    """Training mode, one (B-tile, Out-tile) block with a K (=In) reduction axis.

    VMEM tiles:
      x_ref    : (TB, TK)  x                  (compute dtype)
      xn_ref   : (TB, TK)  x * eps_in         (compute dtype, precomputed in wrapper)
      wmu_ref  : (TK, TN)  weight_mu^T        (compute dtype)
      wsig_ref : (TK, TN)  weight_sigma^T     (compute dtype)
      ovec_ref : (2,  TN)  f32 rows [bias_mu + bias_sigma*bias_eps, eps_out]
      o_ref    : (TB, TN)  output dtype
      acc_*    : (TB, TN)  f32 accumulators, resident across the K axis
    """
    k = pl.program_id(2)

    @pl.when(k == 0)
    def _init():
        acc_mu_ref[...] = jnp.zeros_like(acc_mu_ref)
        acc_sig_ref[...] = jnp.zeros_like(acc_sig_ref)

    acc_mu_ref[...] += jnp.dot(x_ref[...], wmu_ref[...],
                               preferred_element_type=jnp.float32)
    acc_sig_ref[...] += jnp.dot(xn_ref[...], wsig_ref[...],
                                preferred_element_type=jnp.float32)

    @pl.when(k == pl.num_programs(2) - 1)
    def _finalize():
        ovec = ovec_ref[...]                       # (2, TN) f32
        bias = ovec[0:1, :]
        eps_out = ovec[1:2, :]
        o_ref[...] = (acc_mu_ref[...] + eps_out * acc_sig_ref[...]
                      + bias).astype(o_ref.dtype)


def _plain_linear_kernel(x_ref, wmu_ref, bias_ref, o_ref, acc_ref):
    """Eval mode: y = x @ Wmu^T + bias_mu, same K-reduction structure."""
    k = pl.program_id(2)

    @pl.when(k == 0)
    def _init():
        acc_ref[...] = jnp.zeros_like(acc_ref)

    acc_ref[...] += jnp.dot(x_ref[...], wmu_ref[...],
                            preferred_element_type=jnp.float32)

    @pl.when(k == pl.num_programs(2) - 1)
    def _finalize():
        o_ref[...] = (acc_ref[...] + bias_ref[...]).astype(o_ref.dtype)


# ---------------------------------------------------------------------------
# Tiling / VMEM budgeting
# ---------------------------------------------------------------------------

def _vmem_caps():
    """(physical VMEM bytes, bytes we let the pipeline use)."""
    phys = 64 << 20                    # conservative fallback (v7x per-TC VMEM)
    try:
        info = pltpu.get_tpu_info()
        phys = int(getattr(info, "vmem_capacity_bytes", phys))
    except Exception:
        pass
    budget = phys - phys // 8          # leave ~12% for Mosaic-internal scratch
    return phys, budget


def _choose_tiling(B, In, Out, dsize, osize, budget, training,
                   tile_b=None, tile_n=None, tile_k=None):
    """Pick (tb, tn, tk, wbuf) from the VMEM budget; return padded shapes + grid."""
    b_cap = _round_up(B, _SUBLANE)
    in_cap = _round_up(In, _LANE)
    out_cap = _round_up(Out, _LANE)

    if tile_b is not None:
        tb = _round_up(tile_b, _SUBLANE)
    else:
        tb = b_cap if b_cap <= 512 else 256

    n_x = 2 if training else 1         # streamed activations (x and x*eps_in)
    n_w = 2 if training else 1         # streamed weight arrays
    n_acc = 2 if training else 1       # f32 accumulator scratch

    def need(tn, tk, wbuf):
        return (2 * n_x * tb * tk * dsize        # activations, double-buffered
                + wbuf * n_w * tk * tn * dsize   # weight tiles, wbuf-deep
                + 2 * 2 * tn * 4                 # packed bias/eps_out slab
                + 2 * tb * tn * osize            # output tile, double-buffered
                + n_acc * tb * tn * 4            # f32 accumulators
                + (2 << 20))                     # slack for compiler internals

    if tile_n is not None:
        tn_cands = [_round_up(tile_n, _LANE)]
    else:
        tn_cands = sorted({t for t in (2048, 1024, 512, 256, 128) if t <= out_cap}
                          | ({out_cap} if out_cap <= 2048 else set()), reverse=True)
    if tile_k is not None:
        tk_cands = [_round_up(tile_k, _LANE)]
    else:
        tk_cands = sorted({t for t in (4096, 2048, 1024, 512, 256, 128) if t <= in_cap}
                          | ({in_cap} if in_cap <= 4096 else set()), reverse=True)

    best = None
    for tn_c in tn_cands:
        for tk_c in tk_cands:                    # descending: first fit = largest tk
            if need(tn_c, tk_c, 2) <= budget:
                key = (tn_c * tk_c, tn_c)        # maximize area, prefer lane-dense tn
                if best is None or key > best[0]:
                    best = (key, tn_c, tk_c)
                break
    if best is None:                             # pathological budget; minimal tiles
        tn, tk = tn_cands[-1], tk_cands[-1]
    else:
        tn, tk = best[1], best[2]

    B_p, In_p, Out_p = _round_up(B, tb), _round_up(In, tk), _round_up(Out, tn)
    nb, nj, nk = B_p // tb, Out_p // tn, In_p // tk

    # 3-deep weight buffering only when there are enough weight-streaming steps to
    # hide DMA issue latency and the budget allows it (always cheap on v5e/v6e).
    wbuf = 2
    if hasattr(pl, "Buffered") and nj * nk >= 3 and need(tn, tk, 3) <= budget:
        wbuf = 3

    return tb, tn, tk, wbuf, B_p, In_p, Out_p, (nb, nj, nk), need(tn, tk, wbuf)


def _weight_spec(tk, tn, wbuf):
    idx = lambda b, j, k: (k, j)
    if wbuf > 2 and hasattr(pl, "Buffered"):
        try:
            return pl.BlockSpec((tk, tn), idx, pipeline_mode=pl.Buffered(wbuf))
        except TypeError:                        # BlockSpec without pipeline_mode
            pass
    return pl.BlockSpec((tk, tn), idx)


# ---------------------------------------------------------------------------
# Forward wrapper
# ---------------------------------------------------------------------------

def noisy_linear_forward(x, weight_mu, weight_sigma, bias_mu, bias_sigma,
                         bias_epsilon, eps_in, eps_out, *, training=True,
                         compute_dtype=jnp.bfloat16, out_dtype=None,
                         tile_b=None, tile_n=None, tile_k=None):
    """NoisyLinear forward.

    x                        : (B, In) f32
    weight_mu / weight_sigma : (Out, In)   PyTorch layout (transposed once here)
    bias_mu / bias_sigma / bias_epsilon : (Out,)
    eps_in : (In,), eps_out : (Out,)  factorized-noise factors from reset_noise;
    the full weight_epsilon = outer(eps_out, eps_in) is never materialized.
    """
    B, In = x.shape
    Out = weight_mu.shape[0]

    cdt = jnp.dtype(compute_dtype)
    odt = jnp.dtype(out_dtype) if out_dtype is not None else jnp.dtype(x.dtype)

    phys, budget = _vmem_caps()
    (tb, tn, tk, wbuf, B_p, In_p, Out_p, grid, est) = _choose_tiling(
        B, In, Out, cdt.itemsize, odt.itemsize, budget, training,
        tile_b=tile_b, tile_n=tile_n, tile_k=tile_k)

    # --- XLA-side setup; pads + casts fuse into single elementwise passes. -----
    # TODO(synk): in a real model keep parameters stored pre-transposed (and
    # optionally pre-packed per tile / fp8 on v7x, int8 on v6e); this per-call
    # transpose is setup glue only.
    wmu_t = _pad2(weight_mu.T, In_p, Out_p).astype(cdt)
    x_f32 = x.astype(jnp.float32)
    x_p = _pad2(x_f32, B_p, In_p).astype(cdt)

    vmem_limit = int(min(max(est + (2 << 20), 32 << 20), phys))
    cparams = pltpu.CompilerParams(
        # B and Out tiles are independent -> megacore-shardable on v7x; the K
        # reduction axis is last and "arbitrary" (f32 accumulator carried in VMEM).
        # TODO(synk): profile on v7x and switch to pltpu.CORE_PARALLEL if the plain
        # "parallel" string does not actually shard Out tiles across both TCs.
        dimension_semantics=("parallel", "parallel", "arbitrary"),
        vmem_limit_bytes=vmem_limit,
    )

    x_spec = pl.BlockSpec((tb, tk), lambda b, j, k: (b, k))
    out_spec = pl.BlockSpec((tb, tn), lambda b, j, k: (b, j))
    out_shape = jax.ShapeDtypeStruct((B_p, Out_p), odt)

    def _run(wbuf_n):
        w_spec = _weight_spec(tk, tn, wbuf_n)
        if training:
            # x * eps_in in f32 (one rounding into the compute dtype); fuses with
            # the pad/cast above, so the kernel does zero per-tile noise VPU work.
            xn_p = _pad2(x_f32 * eps_in.astype(jnp.float32)[None, :],
                         B_p, In_p).astype(cdt)
            wsig_t = _pad2(weight_sigma.T, In_p, Out_p).astype(cdt)
            bias = (bias_mu + bias_sigma * bias_epsilon).astype(jnp.float32)
            ovec = _pad2(jnp.stack([bias, eps_out.astype(jnp.float32)]), 2, Out_p)
            return pl.pallas_call(
                _noisy_linear_kernel,
                out_shape=out_shape,
                grid=grid,
                in_specs=[x_spec, x_spec, w_spec, w_spec,
                          pl.BlockSpec((2, tn), lambda b, j, k: (0, j))],
                out_specs=out_spec,
                scratch_shapes=[pltpu.VMEM((tb, tn), jnp.float32),
                                pltpu.VMEM((tb, tn), jnp.float32)],
                compiler_params=cparams,
            )(x_p, xn_p, wmu_t, wsig_t, ovec)
        else:
            bias = _pad2(bias_mu.reshape(1, Out).astype(jnp.float32), 1, Out_p)
            return pl.pallas_call(
                _plain_linear_kernel,
                out_shape=out_shape,
                grid=grid,
                in_specs=[x_spec, w_spec,
                          pl.BlockSpec((1, tn), lambda b, j, k: (0, j))],
                out_specs=out_spec,
                scratch_shapes=[pltpu.VMEM((tb, tn), jnp.float32)],
                compiler_params=cparams,
            )(x_p, wmu_t, bias)

    if wbuf > 2:
        try:
            y_p = _run(wbuf)
        except Exception:
            # pl.Buffered(3) not lowerable on this jax/libtpu -> plain double-buffer.
            y_p = _run(2)
    else:
        y_p = _run(2)

    # NOTE: callers that consume bf16 can pass out_dtype=jnp.bfloat16 and keep the
    # padded slab to save output HBM writeback + this slice copy.
    return y_p[:B, :Out]


# ---------------------------------------------------------------------------
# Parameter / noise init mirroring reset_parameters / reset_noise
# ---------------------------------------------------------------------------

def _scale_noise(key, size):
    # x = randn(size); x = sign(x) * sqrt(|x|)
    z = jax.random.normal(key, (size,), dtype=jnp.float32)
    return jnp.sign(z) * jnp.sqrt(jnp.abs(z))


def init_noisy_linear(key, in_features, out_features, std_init=0.4):
    k_wmu, k_bmu, k_ein, k_eout, k_beps = jax.random.split(key, 5)
    mu_range = 1.0 / math.sqrt(in_features)

    weight_mu = jax.random.uniform(
        k_wmu, (out_features, in_features), jnp.float32, -mu_range, mu_range)
    weight_sigma = jnp.full(
        (out_features, in_features), std_init / math.sqrt(in_features), jnp.float32)
    bias_mu = jax.random.uniform(
        k_bmu, (out_features,), jnp.float32, -mu_range, mu_range)
    bias_sigma = jnp.full(
        (out_features,), std_init / math.sqrt(out_features), jnp.float32)

    eps_in = _scale_noise(k_ein, in_features)
    eps_out = _scale_noise(k_eout, out_features)
    weight_epsilon = jnp.outer(eps_out, eps_in)   # reference check only
    bias_epsilon = _scale_noise(k_beps, out_features)

    return dict(weight_mu=weight_mu, weight_sigma=weight_sigma,
                bias_mu=bias_mu, bias_sigma=bias_sigma,
                bias_epsilon=bias_epsilon, eps_in=eps_in, eps_out=eps_out,
                weight_epsilon=weight_epsilon)


if __name__ == "__main__":
    key = jax.random.PRNGKey(0)
    # Tolerances cover the bf16 MXU-feed / matmul-precision differences and the
    # rank-1 summation reorder; structural bugs give O(0.1-1) errors.
    TOL = dict(atol=5e-2, rtol=5e-2)

    # --- Test 1: module-sized small shapes (single-tile grid) -----------------
    k_params, k_x, key = jax.random.split(key, 3)
    batch, in_features, out_features = 8, 32, 16
    params = init_noisy_linear(k_params, in_features, out_features, std_init=0.4)
    x = jax.random.normal(k_x, (batch, in_features), dtype=jnp.float32)

    w_full = params["weight_mu"] + params["weight_sigma"] * params["weight_epsilon"]
    b_full = params["bias_mu"] + params["bias_sigma"] * params["bias_epsilon"]
    y_ref = jnp.dot(x, w_full.T, precision=jax.lax.Precision.HIGHEST) + b_full
    y_eval_ref = (jnp.dot(x, params["weight_mu"].T,
                          precision=jax.lax.Precision.HIGHEST) + params["bias_mu"])

    args = (x, params["weight_mu"], params["weight_sigma"], params["bias_mu"],
            params["bias_sigma"], params["bias_epsilon"],
            params["eps_in"], params["eps_out"])

    y_bf16 = noisy_linear_forward(*args, training=True, compute_dtype=jnp.bfloat16)
    jax.block_until_ready(y_bf16)
    assert y_bf16.shape == (batch, out_features)
    assert jnp.allclose(y_bf16, y_ref, **TOL), "training bf16 path mismatch"

    y_f32 = noisy_linear_forward(*args, training=True, compute_dtype=jnp.float32)
    jax.block_until_ready(y_f32)
    assert jnp.allclose(y_f32, y_ref, **TOL), "training f32 path mismatch"

    y_eval = noisy_linear_forward(*args, training=False, compute_dtype=jnp.bfloat16)
    jax.block_until_ready(y_eval)
    assert jnp.allclose(y_eval, y_eval_ref, **TOL), "eval path mismatch"

    # --- Test 2: forced multi-tile grid (3,3,3) -> exercises the K-reduction
    #             accumulators, B/Out tiling and 3-deep weight buffering. -------
    k_params2, k_x2 = jax.random.split(key)
    b2, in2, out2 = 24, 384, 320
    p2 = init_noisy_linear(k_params2, in2, out2, std_init=0.4)
    x2 = jax.random.normal(k_x2, (b2, in2), dtype=jnp.float32)

    w_full2 = p2["weight_mu"] + p2["weight_sigma"] * p2["weight_epsilon"]
    b_full2 = p2["bias_mu"] + p2["bias_sigma"] * p2["bias_epsilon"]
    y_ref2 = jnp.dot(x2, w_full2.T, precision=jax.lax.Precision.HIGHEST) + b_full2

    y2 = noisy_linear_forward(
        x2, p2["weight_mu"], p2["weight_sigma"], p2["bias_mu"], p2["bias_sigma"],
        p2["bias_epsilon"], p2["eps_in"], p2["eps_out"],
        training=True, compute_dtype=jnp.bfloat16,
        tile_b=8, tile_n=128, tile_k=128)
    jax.block_until_ready(y2)
    assert y2.shape == (b2, out2)
    assert jnp.allclose(y2, y_ref2, **TOL), "multi-tile training path mismatch"

    print("KERNEL_OK")
</pallas_src>

<mosaic_0001>
module attributes {stable_mosaic.version = 11 : i64} {
  func.func @_noisy_linear_kernel(%arg0: i32, %arg1: i32, %arg2: i32, %arg3: memref<8x128xbf16, #tpu.memory_space<vmem>>, %arg4: memref<8x128xbf16, #tpu.memory_space<vmem>>, %arg5: memref<128x128xbf16, #tpu.memory_space<vmem>>, %arg6: memref<128x128xbf16, #tpu.memory_space<vmem>>, %arg7: memref<2x128xf32, #tpu.memory_space<vmem>>, %arg8: memref<8x128xf32, #tpu.memory_space<vmem>>, %arg9: memref<8x128xf32, #tpu.memory_space<vmem>>, %arg10: memref<8x128xf32, #tpu.memory_space<vmem>>) attributes {dimension_semantics = [#tpu.dimension_semantics<parallel>, #tpu.dimension_semantics<parallel>, #tpu.dimension_semantics<arbitrary>], iteration_bounds = array<i64: 1, 1, 1>, scalar_prefetch = 0 : i64, scratch_operands = 2 : i64, tpu.core_type = #tpu.core_type<tc>, window_params = [{transform_indices = @transform_0, window_bounds = array<i64: 8, 128>}, {transform_indices = @transform_1, window_bounds = array<i64: 8, 128>}, {transform_indices = @transform_2, window_bounds = array<i64: 128, 128>}, {transform_indices = @transform_3, window_bounds = array<i64: 128, 128>}, {transform_indices = @transform_4, window_bounds = array<i64: 2, 128>}, {transform_indices = @transform_5, window_bounds = array<i64: 8, 128>}]} {
    %c0_i32 = arith.constant 0 : i32
    %0 = arith.cmpi eq, %arg2, %c0_i32 : i32
    %1 = arith.extui %0 : i1 to i32
    %c0_i32_0 = arith.constant 0 : i32
    %2 = arith.cmpi ne, %1, %c0_i32_0 : i32
    scf.if %2 {
      %cst_19 = arith.constant 0.000000e+00 : f32
      %18 = vector.broadcast %cst_19 : f32 to vector<8x128xf32>
      %c0_20 = arith.constant 0 : index
      %c0_21 = arith.constant 0 : index
      %19 = vector.load %arg9[%c0_20, %c0_21] : memref<8x128xf32, #tpu.memory_space<vmem>>, vector<8x128xf32>
      tpu.vector_store %arg9[%c0_20, %c0_21], %18 {strides = array<i32>} : memref<8x128xf32, #tpu.memory_space<vmem>>, vector<8x128xf32>,
      %cst_22 = arith.constant 0.000000e+00 : f32
      %20 = vector.broadcast %cst_22 : f32 to vector<8x128xf32>
      %c0_23 = arith.constant 0 : index
      %c0_24 = arith.constant 0 : index
      %21 = vector.load %arg10[%c0_23, %c0_24] : memref<8x128xf32, #tpu.memory_space<vmem>>, vector<8x128xf32>
      tpu.vector_store %arg10[%c0_23, %c0_24], %20 {strides = array<i32>} : memref<8x128xf32, #tpu.memory_space<vmem>>, vector<8x128xf32>,
    } else {
    }
    %c0 = arith.constant 0 : index
    %c0_1 = arith.constant 0 : index
    %3 = vector.load %arg9[%c0, %c0_1] : memref<8x128xf32, #tpu.memory_space<vmem>>, vector<8x128xf32>
    %c0_2 = arith.constant 0 : index
    %c0_3 = arith.constant 0 : index
    %4 = vector.load %arg3[%c0_2, %c0_3] : memref<8x128xbf16, #tpu.memory_space<vmem>>, vector<8x128xbf16>
    %c0_4 = arith.constant 0 : index
    %c0_5 = arith.constant 0 : index
    %5 = vector.load %arg5[%c0_4, %c0_5] : memref<128x128xbf16, #tpu.memory_space<vmem>>, vector<128x128xbf16>
    %cst = arith.constant dense<0.000000e+00> : vector<8x128xf32>
    %6 = tpu.matmul %4, %5, %cst {dimension_numbers = #tpu.dot_dimension_numbers<[1], [0], [0], [1], [0, 0, 1, 1], [], []>} : vector<8x128xbf16>, vector<128x128xbf16>, vector<8x128xf32> -> vector<8x128xf32>
    %7 = arith.addf %3, %6 : vector<8x128xf32>
    %c0_6 = arith.constant 0 : index
    %c0_7 = arith.constant 0 : index
    %8 = vector.load %arg9[%c0_6, %c0_7] : memref<8x128xf32, #tpu.memory_space<vmem>>, vector<8x128xf32>
    tpu.vector_store %arg9[%c0_6, %c0_7], %7 {strides = array<i32>} : memref<8x128xf32, #tpu.memory_space<vmem>>, vector<8x128xf32>,
    %c0_8 = arith.constant 0 : index
    %c0_9 = arith.constant 0 : index
    %9 = vector.load %arg10[%c0_8, %c0_9] : memref<8x128xf32, #tpu.memory_space<vmem>>, vector<8x128xf32>
    %c0_10 = arith.constant 0 : index
    %c0_11 = arith.constant 0 : index
    %10 = vector.load %arg4[%c0_10, %c0_11] : memref<8x128xbf16, #tpu.memory_space<vmem>>, vector<8x128xbf16>
    %c0_12 = arith.constant 0 : index
    %c0_13 = arith.constant 0 : index
    %11 = vector.load %arg6[%c0_12, %c0_13] : memref<128x128xbf16, #tpu.memory_space<vmem>>, vector<128x128xbf16>
    %cst_14 = arith.constant dense<0.000000e+00> : vector<8x128xf32>
    %12 = tpu.matmul %10, %11, %cst_14 {dimension_numbers = #tpu.dot_dimension_numbers<[1], [0], [0], [1], [0, 0, 1, 1], [], []>} : vector<8x128xbf16>, vector<128x128xbf16>, vector<8x128xf32> -> vector<8x128xf32>
    %13 = arith.addf %9, %12 : vector<8x128xf32>
    %c0_15 = arith.constant 0 : index
    %c0_16 = arith.constant 0 : index
    %14 = vector.load %arg10[%c0_15, %c0_16] : memref<8x128xf32, #tpu.memory_space<vmem>>, vector<8x128xf32>
    tpu.vector_store %arg10[%c0_15, %c0_16], %13 {strides = array<i32>} : memref<8x128xf32, #tpu.memory_space<vmem>>, vector<8x128xf32>,
    %c0_i32_17 = arith.constant 0 : i32
    %15 = arith.cmpi eq, %arg2, %c0_i32_17 : i32
    %16 = arith.extui %15 : i1 to i32
    %c0_i32_18 = arith.constant 0 : i32
    %17 = arith.cmpi ne, %16, %c0_i32_18 : i32
    scf.if %17 {
      %c0_19 = arith.constant 0 : index
      %c0_20 = arith.constant 0 : index
      %18 = vector.load %arg7[%c0_19, %c0_20] : memref<2x128xf32, #tpu.memory_space<vmem>>, vector<2x128xf32>
      %19 = vector.extract_strided_slice %18 {offsets = [0, 0], sizes = [1, 128], strides = [1, 1]} : vector<2x128xf32> to vector<1x128xf32>
      %20 = vector.extract_strided_slice %18 {offsets = [1, 0], sizes = [1, 128], strides = [1, 1]} : vector<2x128xf32> to vector<1x128xf32>
      %c0_21 = arith.constant 0 : index
      %c0_22 = arith.constant 0 : index
      %21 = vector.load %arg9[%c0_21, %c0_22] : memref<8x128xf32, #tpu.memory_space<vmem>>, vector<8x128xf32>
      %c0_23 = arith.constant 0 : index
      %c0_24 = arith.constant 0 : index
      %22 = vector.load %arg10[%c0_23, %c0_24] : memref<8x128xf32, #tpu.memory_space<vmem>>, vector<8x128xf32>
      %23 = vector.broadcast %20 : vector<1x128xf32> to vector<8x128xf32>
      %24 = arith.mulf %23, %22 : vector<8x128xf32>
      %25 = arith.addf %21, %24 : vector<8x128xf32>
      %26 = vector.broadcast %19 : vector<1x128xf32> to vector<8x128xf32>
      %27 = arith.addf %25, %26 : vector<8x128xf32>
      %c0_25 = arith.constant 0 : index
      %c0_26 = arith.constant 0 : index
      %28 = vector.load %arg8[%c0_25, %c0_26] : memref<8x128xf32, #tpu.memory_space<vmem>>, vector<8x128xf32>
      tpu.vector_store %arg8[%c0_25, %c0_26], %27 {strides = array<i32>} : memref<8x128xf32, #tpu.memory_space<vmem>>, vector<8x128xf32>,
    } else {
    }
    return
  }
  func.func @transform_0(%arg0: i32, %arg1: i32, %arg2: i32) -> (i32, i32) {
    %c0_i32 = arith.constant 0 : i32
    return %arg0, %arg2 : i32, i32
  }
  func.func @transform_1(%arg0: i32, %arg1: i32, %arg2: i32) -> (i32, i32) {
    %c0_i32 = arith.constant 0 : i32
    return %arg0, %arg2 : i32, i32
  }
  func.func @transform_2(%arg0: i32, %arg1: i32, %arg2: i32) -> (i32, i32) {
    %c0_i32 = arith.constant 0 : i32
    return %arg2, %arg1 : i32, i32
  }
  func.func @transform_3(%arg0: i32, %arg1: i32, %arg2: i32) -> (i32, i32) {
    %c0_i32 = arith.constant 0 : i32
    return %arg2, %arg1 : i32, i32
  }
  func.func @transform_4(%arg0: i32, %arg1: i32, %arg2: i32) -> (i32, i32) {
    %c0_i32 = arith.constant 0 : i32
    %c0_i32_0 = arith.constant 0 : i32
    return %c0_i32, %arg1 : i32, i32
  }
  func.func @transform_5(%arg0: i32, %arg1: i32, %arg2: i32) -> (i32, i32) {
    %c0_i32 = arith.constant 0 : i32
    return %arg0, %arg1 : i32, i32
  }
}

</mosaic_0001>

<bundles_post_ra>
// kernel: tpu_custom_call.1
= control target key start
LH: loop header
LB: loop body
LE: loop exit
PB: predicated region body
PF: predicated region fallthrough
CT: control target
= control target key end

     0   :  { %10 = vsyncpa [#allocation5], 0  ;;  %s649_s0 = inlined_call_operand.hbm [shape: bf16[8,128], index: 0, kind: input, shape index: {}]   ;;  %s650_s1 = inlined_call_operand.hbm [shape: bf16[8,128], index: 1, kind: input, shape index: {}]   ;;  %s651_s2 = inlined_call_operand.hbm [shape: bf16[128,128], index: 2, kind: input, shape index: {}]   ;;  %s652_s3 = inlined_call_operand.hbm [shape: bf16[128,128], index: 3, kind: input, shape index: {}]   ;;  %s653_s4 = inlined_call_operand.vmem [shape: f32[2,128], index: 4, kind: input, shape index: {}]   ;;  %s654_s5 = inlined_call_operand.hbm [shape: f32[8,128], index: 5, kind: output, shape index: {}]  }
   0x1   :  { %11 = vsyncpa [#allocation8], 0 }
   0x2   :  { %12 = vsyncpa [#allocation11], 0 }
   0x3   :  { %13 = vsyncpa [#allocation6], 0  ;;  %s547_s18 = smov [#allocation7]   ;;  %s548_s20 = smov [#allocation4]  }
   0x4   :  { %s30_s19 = sshll.u32 %s547_s18, 4  ;;  %s20_s21 = sshll.u32 %s548_s20, 4  ;;  %s31_s19 = int_to_ptr.vmem [resolvable:$true] %s30_s19  ;;  %s21_s21 = int_to_ptr.vmem [resolvable:$true] %s20_s21 }
   0x5   :  { %s429_s24 = scalar_lea.hbm %s650_s1, 64 }
   0x6   :  { %p430_p0 = scmp.ne.s32.totalorder %s650_s1, %s429_s24  ;;  %p433_p1 = scmp.lt.u32.totalorder %s429_s24, %s650_s1 }
   0x8   :  { %p435_p2 = pnand %p433_p1, %p430_p0 }
   0xa   :  { %438 = shalt.err (!%p435_p2)
}
   0xb   :  { %s439_s29 = scalar_lea.vmem %s31_s19, 64  ;;  %p444_p4 = scmp.lt.s32.totalorder %s31_s19, %s31_s19 }
   0xc   :  { %p440_p3 = scmp.ne.s32.totalorder %s31_s19, %s439_s29  ;;  %p445_p5 = scmp.lt.s32.totalorder %s439_s29, %s439_s29 }
   0xe   :  { %p446_p6 = por %p445_p5, %p444_p4 }
  0x10   :  { %p447_p7 = pnand %p446_p6, %p440_p3 }
  0x12   :  { %450 = shalt.err (!%p447_p7)
}
  0x13   :  { %33 = dma.hbm_to_vmem [thread:$0]  %s650_s1, 64, %s31_s19, [#allocation8]  }
  0x14   :  { %s451_s9 = scalar_lea.hbm %s649_s0, 64 }
  0x15   :  { %p452_p8 = scmp.ne.s32.totalorder %s649_s0, %s451_s9  ;;  %p455_p9 = scmp.lt.u32.totalorder %s451_s9, %s649_s0 }
  0x17   :  { %p457_p10 = pnand %p455_p9, %p452_p8 }
  0x19   :  { %460 = shalt.err (!%p457_p10)
}
  0x1a   :  { %s461_s14 = scalar_lea.vmem %s21_s21, 64  ;;  %p466_p12 = scmp.lt.s32.totalorder %s21_s21, %s21_s21 }
  0x1b   :  { %p462_p11 = scmp.ne.s32.totalorder %s21_s21, %s461_s14  ;;  %p467_p13 = scmp.lt.s32.totalorder %s461_s14, %s461_s14 }
  0x1d   :  { %p468_p0 = por %p467_p13, %p466_p12 }
  0x1f   :  { %p469_p1 = pnand %p468_p0, %p462_p11 }
  0x21   :  { %472 = shalt.err (!%p469_p1)
}
  0x22   :  { %23 = dma.hbm_to_vmem [thread:$0]  %s649_s0, 64, %s21_s21, [#allocation5]  }
  0x23   :  { %s549_s16 = smov [#allocation9]   ;;  %s473_s20 = scalar_lea.hbm %s651_s2, 1024 }
  0x24   :  { %s39_s17 = sshll.u32 %s549_s16, 4  ;;  %p474_p2 = scmp.ne.s32.totalorder %s651_s2, %s473_s20  ;;  %s40_s17 = int_to_ptr.vmem [resolvable:$true] %s39_s17 }
  0x25   :  { %p477_p3 = scmp.lt.u32.totalorder %s473_s20, %s651_s2 }
  0x27   :  { %p479_p4 = pnand %p477_p3, %p474_p2 }
  0x29   :  { %482 = shalt.err (!%p479_p4)
}
  0x2a   :  { %s483_s26 = scalar_lea.vmem %s40_s17, 1024  ;;  %p488_p6 = scmp.lt.s32.totalorder %s40_s17, %s40_s17 }
  0x2b   :  { %p484_p5 = scmp.ne.s32.totalorder %s40_s17, %s483_s26  ;;  %p489_p7 = scmp.lt.s32.totalorder %s483_s26, %s483_s26 }
  0x2d   :  { %p490_p8 = por %p489_p7, %p488_p6 }
  0x2f   :  { %p491_p9 = pnand %p490_p8, %p484_p5 }
  0x31   :  { %494 = shalt.err (!%p491_p9)
}
  0x32   :  { %s550_s0 = smov 64   ;;  %s551_s21 = smov 4  }
  0x33   :  { %45 = dma.hbm_to_vmem [thread:$0]  %s651_s2, 1024, %s40_s17, [#allocation8], %s550_s0, %s550_s0, %s551_s21  }
  0x34   :  { %s552_s29 = smov [#allocation10]   ;;  %s495_s8 = scalar_lea.hbm %s652_s3, 1024 }
  0x35   :  { %s51_s30 = sshll.u32 %s552_s29, 4  ;;  %p496_p10 = scmp.ne.s32.totalorder %s652_s3, %s495_s8  ;;  %s52_s30 = int_to_ptr.vmem [resolvable:$true] %s51_s30 }
  0x36   :  { %p499_p11 = scmp.lt.u32.totalorder %s495_s8, %s652_s3 }
  0x38   :  { %p501_p12 = pnand %p499_p11, %p496_p10 }
  0x3a   :  { %504 = shalt.err (!%p501_p12)
}
  0x3b   :  { %s505_s13 = scalar_lea.vmem %s52_s30, 1024  ;;  %p510_p0 = scmp.lt.s32.totalorder %s52_s30, %s52_s30 }
  0x3c   :  { %p506_p13 = scmp.ne.s32.totalorder %s52_s30, %s505_s13  ;;  %p511_p1 = scmp.lt.s32.totalorder %s505_s13, %s505_s13 }
  0x3e   :  { %p512_p2 = por %p511_p1, %p510_p0 }
  0x40   :  { %p513_p3 = pnand %p512_p2, %p506_p13 }
  0x42   :  { %516 = shalt.err (!%p513_p3)
}
  0x43   :  { %57 = dma.hbm_to_vmem [thread:$0]  %s652_s3, 1024, %s52_s30, [#allocation11], %s550_s0, %s550_s0, %s551_s21  }
  0x44   :  { %539 = dma.done.wait [#allocation5], 64  }
  0x45   :  { %540 = vsyncadd [#allocation5], 4294967232 }
  0x46   :  { %541 = dma.done.wait [#allocation8], 1088  }
  0x47   :  { %542 = vsyncadd [#allocation8], 4294966208 }
  0x48   :  { %543 = dma.done.wait [#allocation11], 1024  }
  0x49   :  { %544 = vsyncadd [#allocation11], 4294966272  ;;  %v553_v0 = vmov 0.0   ;;  %vm554_vm0 = vmmov 0   ;;  %v413_v1 = vld [vmem:[#allocation9] sm:$0xff]   ;;  %v415_v3 = vld [vmem:[#allocation9 + $0x8] sm:$0xff]   ;;  %v301_v19 = vlaneseq }
  0x4a   :  { %364 = vmatprep.subr.bf16.mxu0 %v553_v0  ;;  %384 = vmatprep.subr.bf16.mxu1 %v553_v0  ;;  %v414_v2 = vld [vmem:[#allocation10] sm:$0xff]   ;;  %v416_v4 = vld [vmem:[#allocation10 + $0x8] sm:$0xff]   ;;  %v417_v5 = vld [vmem:[#allocation9 + $0x10] sm:$0xff]   ;;  %s555_s15 = smov [#allocation12]  }
  0x4b   :  { %380 = vmatprep.mubr.msk.bf16.mxu0 %vm554_vm0, %v553_v0  ;;  %400 = vmatprep.mubr.msk.bf16.mxu1 %vm554_vm0, %v553_v0  ;;  %v418_v6 = vld [vmem:[#allocation10 + $0x10] sm:$0xff]   ;;  %v419_v7 = vld [vmem:[#allocation9 + $0x18] sm:$0xff]   ;;  %v421_v9 = vld [vmem:[#allocation9 + $0x20] sm:$0xff]   ;;  %v302_v20 = vshrl.u32 %v301_v19, 7  ;;  %s319_s16 = sshll.u32 %s555_s15, 4  ;;  %s320_s16 = int_to_ptr.vmem [resolvable:$true] %s319_s16 }
  0x4c   :  { %365 = vmatpush3.bf16.msra.mxu0 %v413_v1  ;;  %385 = vmatpush3.bf16.msra.mxu1 %v414_v2  ;;  %v420_v8 = vld [vmem:[#allocation10 + $0x18] sm:$0xff]   ;;  %v422_v10 = vld [vmem:[#allocation10 + $0x20] sm:$0xff]   ;;  %v423_v11 = vld [vmem:[#allocation9 + $0x28] sm:$0xff]   ;;  %s517_s17 = scalar_lea.vmem %s320_s16, 128  ;;  %p522_p5 = scmp.lt.s32.totalorder %s320_s16, %s320_s16 }
  0x4d   :  { %366 = vmatprep.subr.bf16.mxu0 %v553_v0  ;;  %386 = vmatprep.subr.bf16.mxu1 %v553_v0  ;;  %v424_v12 = vld [vmem:[#allocation10 + $0x28] sm:$0xff]   ;;  %v425_v13 = vld [vmem:[#allocation9 + $0x30] sm:$0xff]   ;;  %v427_v15 = vld [vmem:[#allocation9 + $0x38] sm:$0xff]   ;;  %v303_v21 = vsub.s32 1, %v302_v20  ;;  %v309_v24 = vsub.s32 0, %v302_v20  ;;  %p518_p4 = scmp.ne.s32.totalorder %s320_s16, %s517_s17  ;;  %p523_p6 = scmp.lt.s32.totalorder %s517_s17, %s517_s17 }
  0x4e   :  { %v426_v14 = vld [vmem:[#allocation10 + $0x30] sm:$0xff]   ;;  %v428_v16 = vld [vmem:[#allocation10 + $0x38] sm:$0xff]  }
  0x4f   :  { %v80_v17 = vld [vmem:[#allocation4] sm:$0xf]  ;;  %v188_v18 = vld [vmem:[#allocation7] sm:$0xf]  ;;  %p524_p7 = por %p523_p6, %p522_p5 }
  0x50   :  { %367 = vmatpush3.bf16.msra.mxu0 %v415_v3  ;;  %387 = vmatpush3.bf16.msra.mxu1 %v416_v4  ;;  %v298_v22 = vld [vmem:[%s653_s4] sm:$0x3] }
  0x51   :  { %368 = vmatprep.subr.bf16.mxu0 %v553_v0  ;;  %388 = vmatprep.subr.bf16.mxu1 %v553_v0  ;;  %v304_v23 = vrot.slane %v298_v22, %v303_v21  ;;  %v310_v29 = vrot.slane %v298_v22, %v309_v24  ;;  %p525_p8 = pnand %p524_p7, %p518_p4 }
  0x54   :  { %369 = vmatpush3.bf16.msra.mxu0 %v417_v5  ;;  %389 = vmatpush3.bf16.msra.mxu1 %v418_v6 }
  0x55   :  { %370 = vmatprep.subr.bf16.mxu0 %v553_v0  ;;  %390 = vmatprep.subr.bf16.mxu1 %v553_v0 }
  0x58   :  { %371 = vmatpush3.bf16.msra.mxu0 %v419_v7  ;;  %391 = vmatpush3.bf16.msra.mxu1 %v420_v8 }
  0x59   :  { %372 = vmatprep.subr.bf16.mxu0 %v553_v0  ;;  %392 = vmatprep.subr.bf16.mxu1 %v553_v0 }
  0x5c   :  { %373 = vmatpush3.bf16.msra.mxu0 %v421_v9  ;;  %393 = vmatpush3.bf16.msra.mxu1 %v422_v10 }
  0x5d   :  { %374 = vmatprep.subr.bf16.mxu0 %v553_v0  ;;  %394 = vmatprep.subr.bf16.mxu1 %v553_v0 }
  0x60   :  { %375 = vmatpush3.bf16.msra.mxu0 %v423_v11  ;;  %395 = vmatpush3.bf16.msra.mxu1 %v424_v12 }
  0x61   :  { %376 = vmatprep.subr.bf16.mxu0 %v553_v0  ;;  %396 = vmatprep.subr.bf16.mxu1 %v553_v0 }
  0x64   :  { %377 = vmatpush3.bf16.msra.mxu0 %v425_v13  ;;  %397 = vmatpush3.bf16.msra.mxu1 %v426_v14 }
  0x65   :  { %378 = vmatprep.subr.bf16.mxu0 %v553_v0  ;;  %398 = vmatprep.subr.bf16.mxu1 %v553_v0 }
  0x68   :  { %379 = vmatpush3.bf16.msra.mxu0 %v427_v15  ;;  %399 = vmatpush3.bf16.msra.mxu1 %v428_v16 }
  0x6b   :  { %381 = vmatmul.mubr.bf16.vlgmr.msra.gmra.mrb[0].mxu0 %v80_v17  ;;  %401 = vmatmul.mubr.bf16.vlgmr.msra.gmra.mrb[0].mxu1 %v188_v18 }
 0x13e   :  { %v179_v25 = vpop.f32.mrb[0].mxu0  ;;  %v287_v26 = vpop.f32.mrb[0].mxu1 }
 0x13f   :  { %v382_v27 = vpop.f32.mrb[1].mxu0  ;;  %v305_v28 = vmul.f32 %v304_v23, %v287_v26  ;;  %v402_v30 = vpop.f32.mrb[1].mxu1 }
 0x140   :  { %v182_v31 = vpop.f32.mrb[2].mxu0  ;;  %v290_v32 = vpop.f32.mrb[2].mxu1 }
 0x141   :  { %v383_v33 = vpop.f32.mrb[3].mxu0  ;;  %v306_v34 = vadd.f32 %v305_v28, %v179_v25  ;;  %v403_v35 = vpop.f32.mrb[3].mxu1 }
 0x143   :  { %v311_v36 = vadd.f32 %v310_v29, %v306_v34 }
 0x145   :  { %312 = vst [vmem:[#allocation12] sm:$0xff] %v311_v36 }
 0x146   :  { %528 = shalt.err (!%p525_p8)
}
 0x147   :  { %s529_s19 = scalar_lea.hbm %s654_s5, 128 }
 0x148   :  { %p530_p9 = scmp.ne.s32.totalorder %s654_s5, %s529_s19  ;;  %p533_p10 = scmp.lt.u32.totalorder %s529_s19, %s654_s5 }
 0x14a   :  { %p535_p11 = pnand %p533_p10, %p530_p9 }
 0x14c   :  { %538 = shalt.err (!%p535_p11)
}
 0x14d   :  { %322 = dma.vmem_to_hbm [thread:$0]  %s320_s16, 128, %s654_s5, [#allocation6]  }
 0x14e   :  { %545 = dma.done.wait [#allocation6], 128  }
 0x14f   :  { %546 = vsyncadd [#allocation6], 4294967168 }
 0x150   :  { %326 = vsyncpa [#allocation5], 1 }
 0x151   :  { %327 = vsyncpa [#allocation8], 1 }
 0x152   :  { %328 = vsyncpa [#allocation11], 1 }
 0x153   :  { %329 = vsyncpa [#allocation6], 1 }

</bundles_post_ra>
